<compile_context>
chip_gen: v5e
topology: v5e:2x2
jax: 0.10.0
libtpu: 0.0.40
codegen_flags: <defaults>
</compile_context>

<pallas_src>
import functools

import numpy as np
import jax
import jax.numpy as jnp
from jax.experimental import pallas as pl
from jax.experimental.pallas import tpu as pltpu


def _lambda_shortcut_kernel(x_ref, s_ref, o_ref, *, nb, c, c_out, pad):
    # x_ref: (nb*c,      H*W)           batch-folded, flattened-spatial input
    # s_ref: (H*W,       H_out*W_out)   0/1 stride-2 spatial selection matrix
    # o_ref: (nb*c_out,  H_out*W_out)   batch-folded, channel-padded output
    hw_out = o_ref.shape[-1]
    # One MXU matmul per grid step: M = nb*c (large), K = H*W, N = H_out*W_out.
    sub = jnp.dot(x_ref[...], s_ref[...], preferred_element_type=jnp.float32)
    sub = sub.astype(o_ref.dtype)
    if pad > 0:
        zpad = jnp.zeros((pad, hw_out), o_ref.dtype)
    for b in range(nb):  # static unroll: three small sublane-sliced stores each
        base = b * c_out
        if pad > 0:
            o_ref[base:base + pad, :] = zpad
            o_ref[base + pad + c:base + c_out, :] = zpad
        o_ref[base + pad:base + pad + c, :] = sub[b * c:(b + 1) * c, :]


@functools.lru_cache(maxsize=None)
def _selection_matrix(h, w, dtype_name):
    """(H*W, H_out*W_out) 0/1 matrix picking pixels (::2, ::2) of the flattened
    spatial dim.  Cached so repeated calls don't rebuild / re-upload it."""
    h_out, w_out = (h + 1) // 2, (w + 1) // 2
    hw, hw_out = h * w, h_out * w_out
    jj = np.arange(hw_out)
    src = (2 * (jj // w_out)) * w + 2 * (jj % w_out)
    s = np.zeros((hw, hw_out), dtype=dtype_name)
    s[src, jj] = 1
    return jnp.asarray(s)


def _pick_batch_block(n, c, c_out, per_batch_bytes, vmem_budget_bytes=8 << 20):
    """Largest divisor nb of n whose double-buffered x/out blocks fit the VMEM
    budget.  Sublane dims of partial blocks must stay 8-aligned; no forced
    minimum grid-step count (single-TC chips gain nothing from it)."""
    best = None
    fallback = n
    for nb in range(1, n + 1):
        if n % nb:
            continue
        if nb < n and ((nb * c) % 8 or (nb * c_out) % 8):
            continue
        fallback = min(fallback, nb)
        if 2 * nb * per_batch_bytes <= vmem_budget_bytes:
            best = nb
    return best if best is not None else fallback


def lambda_layer(x, planes):
    """Pallas TPU implementation of LambdaLayer with the ResNet option-A lambda."""
    n, c, h, w = x.shape
    pad = planes // 4
    c_out = c + 2 * pad
    h_out, w_out = (h + 1) // 2, (w + 1) // 2   # matches PyTorch x[:, :, ::2, ::2]
    hw, hw_out = h * w, h_out * w_out
    dtype = x.dtype

    s_mat = _selection_matrix(h, w, jnp.dtype(dtype).name)

    itemsize = jnp.dtype(dtype).itemsize
    per_batch_bytes = (c * hw + c_out * hw_out) * itemsize
    nb = _pick_batch_block(n, c, c_out, per_batch_bytes)
    grid = (n // nb,)

    x2 = x.reshape(n * c, hw)                    # free, contiguous reshape

    kernel = functools.partial(
        _lambda_shortcut_kernel, nb=nb, c=c, c_out=c_out, pad=pad)

    cost = pl.CostEstimate(
        flops=2 * n * c * hw * hw_out,
        transcendentals=0,
        bytes_accessed=(n * c * hw + hw * hw_out + n * c_out * hw_out) * itemsize,
    )

    out2 = pl.pallas_call(
        kernel,
        out_shape=jax.ShapeDtypeStruct((n * c_out, hw_out), dtype),
        grid=grid,
        in_specs=[
            pl.BlockSpec((nb * c, hw), lambda i: (i, 0)),
            pl.BlockSpec((hw, hw_out), lambda i: (0, 0)),
        ],
        out_specs=pl.BlockSpec((nb * c_out, hw_out), lambda i: (i, 0)),
        compiler_params=pltpu.CompilerParams(dimension_semantics=("parallel",)),
        cost_estimate=cost,
    )(x2, s_mat)

    return out2.reshape(n, c_out, h_out, w_out)


if __name__ == "__main__":
    key = jax.random.PRNGKey(0)
    # Small shapes consistent with the module's usage: N=2, C_in=4, H=W=16,
    # shortcut to planes=8 (pad = planes // 4 = 2 per side -> C_out = 8).
    N, C, H, W = 2, 4, 16, 16
    planes = 8
    x = jax.random.normal(key, (N, C, H, W), dtype=jnp.float32)

    out = lambda_layer(x, planes)
    out = jax.block_until_ready(out)

    # Pure-JAX reference of the same lambda.
    pad = planes // 4
    ref = jnp.pad(
        x[:, :, ::2, ::2], ((0, 0), (pad, pad), (0, 0), (0, 0)), mode="constant"
    )

    assert out.shape == (N, C + 2 * pad, (H + 1) // 2, (W + 1) // 2), out.shape
    assert out.dtype == x.dtype, out.dtype
    assert jnp.allclose(out, ref), "mismatch vs reference"

    print("KERNEL_OK")
</pallas_src>

<mosaic_0001>
module attributes {stable_mosaic.version = 11 : i64} {
  func.func @_lambda_shortcut_kernel(%arg0: i32, %arg1: memref<8x256xf32, #tpu.memory_space<vmem>>, %arg2: memref<256x64xf32, #tpu.memory_space<vmem>>, %arg3: memref<16x64xf32, #tpu.memory_space<vmem>>) attributes {dimension_semantics = [#tpu.dimension_semantics<parallel>], iteration_bounds = array<i64: 1>, scalar_prefetch = 0 : i64, scratch_operands = 0 : i64, tpu.core_type = #tpu.core_type<tc>, window_params = [{transform_indices = @transform_0, window_bounds = array<i64: 8, 256>}, {pipeline_mode = #tpu.pipeline_mode<synchronous>, transform_indices = @transform_1, window_bounds = array<i64: 256, 64>}, {transform_indices = @transform_2, window_bounds = array<i64: 16, 64>}]} {
    %c0 = arith.constant 0 : index
    %c0_0 = arith.constant 0 : index
    %0 = vector.load %arg1[%c0, %c0_0] : memref<8x256xf32, #tpu.memory_space<vmem>>, vector<8x256xf32>
    %c0_1 = arith.constant 0 : index
    %c0_2 = arith.constant 0 : index
    %1 = vector.load %arg2[%c0_1, %c0_2] : memref<256x64xf32, #tpu.memory_space<vmem>>, vector<256x64xf32>
    %cst = arith.constant dense<0.000000e+00> : vector<8x64xf32>
    %2 = tpu.matmul %0, %1, %cst {dimension_numbers = #tpu.dot_dimension_numbers<[1], [0], [0], [1], [0, 0, 1, 1], [], []>} : vector<8x256xf32>, vector<256x64xf32>, vector<8x64xf32> -> vector<8x64xf32>
    %cst_3 = arith.constant 0.000000e+00 : f32
    %3 = vector.broadcast %cst_3 : f32 to vector<2x64xf32>
    %c0_4 = arith.constant 0 : index
    %c0_5 = arith.constant 0 : index
    %4 = vector.load %arg3[%c0_4, %c0_5] : memref<16x64xf32, #tpu.memory_space<vmem>>, vector<2x64xf32>
    tpu.vector_store %arg3[%c0_4, %c0_5], %3 {strides = array<i32>} : memref<16x64xf32, #tpu.memory_space<vmem>>, vector<2x64xf32>,
    %c6 = arith.constant 6 : index
    %c0_6 = arith.constant 0 : index
    %5 = vector.load %arg3[%c6, %c0_6] : memref<16x64xf32, #tpu.memory_space<vmem>>, vector<2x64xf32>
    tpu.vector_store %arg3[%c6, %c0_6], %3 {strides = array<i32>} : memref<16x64xf32, #tpu.memory_space<vmem>>, vector<2x64xf32>,
    %6 = vector.extract_strided_slice %2 {offsets = [0, 0], sizes = [4, 64], strides = [1, 1]} : vector<8x64xf32> to vector<4x64xf32>
    %c2 = arith.constant 2 : index
    %c0_7 = arith.constant 0 : index
    %7 = vector.load %arg3[%c2, %c0_7] : memref<16x64xf32, #tpu.memory_space<vmem>>, vector<4x64xf32>
    tpu.vector_store %arg3[%c2, %c0_7], %6 {strides = array<i32>} : memref<16x64xf32, #tpu.memory_space<vmem>>, vector<4x64xf32>,
    %c8 = arith.constant 8 : index
    %c0_8 = arith.constant 0 : index
    %8 = vector.load %arg3[%c8, %c0_8] : memref<16x64xf32, #tpu.memory_space<vmem>>, vector<2x64xf32>
    tpu.vector_store %arg3[%c8, %c0_8], %3 {strides = array<i32>} : memref<16x64xf32, #tpu.memory_space<vmem>>, vector<2x64xf32>,
    %c14 = arith.constant 14 : index
    %c0_9 = arith.constant 0 : index
    %9 = vector.load %arg3[%c14, %c0_9] : memref<16x64xf32, #tpu.memory_space<vmem>>, vector<2x64xf32>
    tpu.vector_store %arg3[%c14, %c0_9], %3 {strides = array<i32>} : memref<16x64xf32, #tpu.memory_space<vmem>>, vector<2x64xf32>,
    %10 = vector.extract_strided_slice %2 {offsets = [4, 0], sizes = [4, 64], strides = [1, 1]} : vector<8x64xf32> to vector<4x64xf32>
    %c10 = arith.constant 10 : index
    %c0_10 = arith.constant 0 : index
    %11 = vector.load %arg3[%c10, %c0_10] : memref<16x64xf32, #tpu.memory_space<vmem>>, vector<4x64xf32>
    tpu.vector_store %arg3[%c10, %c0_10], %10 {strides = array<i32>} : memref<16x64xf32, #tpu.memory_space<vmem>>, vector<4x64xf32>,
    return
  }
  func.func @transform_0(%arg0: i32) -> (i32, i32) {
    %c0_i32 = arith.constant 0 : i32
    %c0_i32_0 = arith.constant 0 : i32
    return %arg0, %c0_i32 : i32, i32
  }
  func.func @transform_1(%arg0: i32) -> (i32, i32) {
    %c0_i32 = arith.constant 0 : i32
    %c0_i32_0 = arith.constant 0 : i32
    %c0_i32_1 = arith.constant 0 : i32
    return %c0_i32, %c0_i32_0 : i32, i32
  }
  func.func @transform_2(%arg0: i32) -> (i32, i32) {
    %c0_i32 = arith.constant 0 : i32
    %c0_i32_0 = arith.constant 0 : i32
    return %arg0, %c0_i32 : i32, i32
  }
}

</mosaic_0001>

<bundles_post_ra>
// kernel: tpu_custom_call.1
= control target key start
LH: loop header
LB: loop body
LE: loop exit
PB: predicated region body
PF: predicated region fallthrough
CT: control target
= control target key end

     0   :  { %s267_s0 = inlined_call_operand.vmem [shape: f32[8,256], index: 0, kind: input, shape index: {}]   ;;  %s268_s1 = inlined_call_operand.vmem [shape: f32[256,64], index: 1, kind: input, shape index: {}]   ;;  %s269_s2 = inlined_call_operand.hbm [shape: f32[16,64], index: 2, kind: output, shape index: {}]  }
   0x1   :  { %v29_v0 = vld [vmem:[%s268_s1 + $0x78] sm:$0xff]  ;;  %v28_v2 = vld [vmem:[%s268_s1 + $0x70] sm:$0xff]  ;;  %v27_v4 = vld [vmem:[%s268_s1 + $0x68] sm:$0xff] }
   0x2   :  { %v45_v1 = vld [vmem:[%s268_s1 + $0xf8] sm:$0xff]  ;;  %46 = vmatpush.msra.mxu0 %v29_v0  ;;  %v44_v3 = vld [vmem:[%s268_s1 + $0xf0] sm:$0xff]  ;;  %v43_v5 = vld [vmem:[%s268_s1 + $0xe8] sm:$0xff] }
   0x3   :  { %66 = vmatpush.msra.mxu1 %v45_v1  ;;  %v26_v6 = vld [vmem:[%s268_s1 + $0x60] sm:$0xff]  ;;  %v25_v8 = vld [vmem:[%s268_s1 + $0x58] sm:$0xff]  ;;  %v24_v10 = vld [vmem:[%s268_s1 + $0x50] sm:$0xff] }
   0x4   :  { %47 = vmatpush.msra.mxu0 %v28_v2  ;;  %v42_v7 = vld [vmem:[%s268_s1 + $0xe0] sm:$0xff]  ;;  %v41_v9 = vld [vmem:[%s268_s1 + $0xd8] sm:$0xff]  ;;  %v40_v11 = vld [vmem:[%s268_s1 + $0xd0] sm:$0xff] }
   0x5   :  { %67 = vmatpush.msra.mxu1 %v44_v3  ;;  %v23_v12 = vld [vmem:[%s268_s1 + $0x48] sm:$0xff] }
   0x6   :  { %48 = vmatpush.msra.mxu0 %v27_v4  ;;  %v39_v13 = vld [vmem:[%s268_s1 + $0xc8] sm:$0xff] }
   0x7   :  { %68 = vmatpush.msra.mxu1 %v43_v5 }
   0x8   :  { %49 = vmatpush.msra.mxu0 %v26_v6 }
   0x9   :  { %69 = vmatpush.msra.mxu1 %v42_v7 }
   0xa   :  { %50 = vmatpush.msra.mxu0 %v25_v8 }
   0xb   :  { %70 = vmatpush.msra.mxu1 %v41_v9 }
   0xc   :  { %51 = vmatpush.msra.mxu0 %v24_v10 }
   0xd   :  { %71 = vmatpush.msra.mxu1 %v40_v11 }
   0xe   :  { %7 = vsyncpa [#allocation3], 0  ;;  %v22_v14 = vld [vmem:[%s268_s1 + $0x40] sm:$0xff]  ;;  %52 = vmatpush.msra.mxu0 %v23_v12  ;;  %v21_v16 = vld [vmem:[%s268_s1 + $0x38] sm:$0xff]  ;;  %vm86_vm0 = vcmask 517120   ;;  %v143_v34 = vmov 0.0  }
   0xf   :  { %v38_v15 = vld [vmem:[%s268_s1 + $0xc0] sm:$0xff]  ;;  %72 = vmatpush.msra.mxu1 %v39_v13  ;;  %v37_v17 = vld [vmem:[%s268_s1 + $0xb8] sm:$0xff]  ;;  %v20_v18 = vld [vmem:[%s268_s1 + $0x30] sm:$0xff]  ;;  %87 = vst.msk [vmem:[#allocation2] sm:$0x3] %vm86_vm0, %v143_v34  ;;  %s101_s24 = sshll.u32 %s269_s2, 4  ;;  %s102_s24 = int_to_ptr.hbm [resolvable:$true] %s101_s24 }
  0x10   :  { %53 = vmatpush.msra.mxu0 %v22_v14  ;;  %v36_v19 = vld [vmem:[%s268_s1 + $0xb0] sm:$0xff]  ;;  %v19_v20 = vld [vmem:[%s268_s1 + $0x28] sm:$0xff]  ;;  %v18_v22 = vld [vmem:[%s268_s1 + $0x20] sm:$0xff]  ;;  %88 = vst.msk [vmem:[#allocation2 + $0x6] sm:$0x3] %vm86_vm0, %v143_v34  ;;  %vm89_vm1 = vcmask 519168  }
  0x11   :  { %73 = vmatpush.msra.mxu1 %v38_v15  ;;  %v35_v21 = vld [vmem:[%s268_s1 + $0xa8] sm:$0xff]  ;;  %v34_v23 = vld [vmem:[%s268_s1 + $0xa0] sm:$0xff]  ;;  %v17_v24 = vld [vmem:[%s268_s1 + $0x18] sm:$0xff]  ;;  %91 = vst.msk [vmem:[#allocation2 + $0x8] sm:$0x3] %vm86_vm0, %v143_v34  ;;  %vm93_vm2 = vcmask 523268  }
  0x12   :  { %54 = vmatpush.msra.mxu0 %v21_v16  ;;  %v33_v25 = vld [vmem:[%s268_s1 + $0x98] sm:$0xff]  ;;  %v16_v26 = vld [vmem:[%s268_s1 + $0x10] sm:$0xff]  ;;  %v15_v28 = vld [vmem:[%s268_s1 + $0x8] sm:$0xff]  ;;  %92 = vst.msk [vmem:[#allocation2 + $0xe] sm:$0x3] %vm86_vm0, %v143_v34  ;;  %s146_s25 = smov 8  }
  0x13   :  { %74 = vmatpush.msra.mxu1 %v37_v17  ;;  %v32_v27 = vld [vmem:[%s268_s1 + $0x90] sm:$0xff]  ;;  %v31_v29 = vld [vmem:[%s268_s1 + $0x88] sm:$0xff]  ;;  %v14_v30 = vld [vmem:[%s268_s1] sm:$0xff] }
  0x14   :  { %55 = vmatpush.msra.mxu0 %v20_v18  ;;  %v30_v31 = vld [vmem:[%s268_s1 + $0x80] sm:$0xff]  ;;  %v13_v33 = vld [vmem:[%s267_s0 + $0x8] sm:$0xff]  ;;  %s144_s1 = smov [#allocation2]  }
  0x15   :  { %75 = vmatpush.msra.mxu1 %v36_v19  ;;  %v12_v32 = vld [vmem:[%s267_s0] sm:$0xff]  ;;  %s99_s21 = sshll.u32 %s144_s1, 4  ;;  %s145_s0 = smov 128   ;;  %s100_s21 = int_to_ptr.vmem [resolvable:$true] %s99_s21 }
  0x16   :  { %56 = vmatpush.msra.mxu0 %v19_v20 }
  0x17   :  { %76 = vmatpush.msra.mxu1 %v35_v21 }
  0x18   :  { %57 = vmatpush.msra.mxu0 %v18_v22 }
  0x19   :  { %77 = vmatpush.msra.mxu1 %v34_v23 }
  0x1a   :  { %58 = vmatpush.msra.mxu0 %v17_v24 }
  0x1b   :  { %78 = vmatpush.msra.mxu1 %v33_v25 }
  0x1c   :  { %59 = vmatpush.msra.mxu0 %v16_v26 }
  0x1d   :  { %79 = vmatpush.msra.mxu1 %v32_v27 }
  0x1e   :  { %60 = vmatpush.msra.mxu0 %v15_v28 }
  0x1f   :  { %80 = vmatpush.msra.mxu1 %v31_v29 }
  0x20   :  { %61 = vmatpush.msra.mxu0 %v14_v30 }
  0x21   :  { %81 = vmatpush.msra.mxu1 %v30_v31  ;;  %62 = vmatmul.f32.vlgmr.msra.gmra.mxu0 %v12_v32 }
  0x22   :  { %82 = vmatmul.f32.vlgmr.msra.gmra.mxu1 %v13_v33 }
  0x9e   :  { %v63_v35 = vpop.f32.mrf.mxu0 }
  0x9f   :  { %v83_v36 = vpop.f32.mrf.mxu1 }
  0xa0   :  { %v84_v37 = vadd.f32 %v83_v36, %v63_v35 }
  0xa2   :  { %90 = vst.msk [vmem:[#allocation2 + $0x2] sm:$0xf] %vm89_vm1, %v84_v37 }
  0xa3   :  { %94 = vst.msk [vmem:[#allocation2 + $0x6] sm:$0xf0] %vm93_vm2, %v84_v37 }
  0xa4   :  { %107 = dma.vmem_to_hbm [thread:$0]  %s100_s21, 256, %s102_s24, [#allocation3], %s145_s0, %s145_s0, %s146_s25  }
  0xa5   :  { %141 = dma.done.wait [#allocation3], 256  }
  0xa6   :  { %142 = vsyncadd [#allocation3], 4294967040 }
  0xa7   :  { %112 = vsyncpa [#allocation3], 1 }

</bundles_post_ra>
